<compile_context>
chip_gen: v7x
topology: tpu7x:2x2x1
jax: 0.10.0
libtpu: 0.0.40
codegen_flags: <defaults>
</compile_context>

<pallas_src>
import functools

import jax
import jax.numpy as jnp
from jax.experimental import pallas as pl
from jax.experimental.pallas import tpu as pltpu


# ------------------------------ PE table (buffer) ------------------------------

def positional_encoding_table(hidden_dim, max_seq_len=2000):
    """Sinusoidal table identical to the PyTorch __init__ buffer."""
    positions = jnp.arange(max_seq_len, dtype=jnp.float32)[:, None]
    div_term = jnp.exp(jnp.arange(0, hidden_dim, 2, dtype=jnp.float32)
                       * (-jnp.log(jnp.float32(10000.0)) / hidden_dim))
    angles = positions * div_term                      # (max_seq_len, ceil(H/2))
    pe = jnp.zeros((max_seq_len, hidden_dim), jnp.float32)
    pe = pe.at[:, 0::2].set(jnp.sin(angles[:, : (hidden_dim + 1) // 2]))
    pe = pe.at[:, 1::2].set(jnp.cos(angles[:, : hidden_dim // 2]))
    return pe


# --------------------------------- kernel ---------------------------------

def _add_pe_kernel(x_ref, pe_ref, o_ref):
    # x block: (tb, tn), pe block: (1, tn) -> sublane broadcast on the VPU.
    o_ref[...] = x_ref[...] + pe_ref[...]


# ------------------------------ tile selection ------------------------------

def _round_up(x, m):
    return ((x + m - 1) // m) * m


def _pick_tiles(B, L, itemsize, max_block_bytes):
    """Pick (tb, tn): (8,128)-aligned block dims under a VMEM byte budget."""
    max_elems = max(8 * 128, max_block_bytes // itemsize)
    b8 = _round_up(B, 8)          # row dim rounded to a full sublane tile
    l128 = _round_up(L, 128)      # lane dim rounded to a full lane tile

    if 8 * l128 <= max_elems:
        # Full lane width fits with one sublane tile of rows: take all lanes,
        # then grow rows under the budget.
        tn = l128
        tb = min(b8, max(8, (max_elems // tn) // 8 * 8))
    else:
        # Lane dim alone exceeds the budget: keep one sublane tile of rows and
        # grow lanes ("grow tn when tb is small").
        tb = min(b8, 8)
        tn = min(l128, max(128, (max_elems // tb) // 128 * 128))

    # Megacore (v7x has 2 TCs): ensure >=2 grid steps along one "parallel"
    # axis whenever the array is big enough to split.
    if pl.cdiv(b8, tb) * pl.cdiv(l128, tn) < 2:
        if b8 > 8:
            tb = _round_up(pl.cdiv(b8, 2), 8)
        elif l128 > 128:
            tn = _round_up(pl.cdiv(l128, 2), 128)
    return tb, tn


# --------------------------------- wrapper ---------------------------------

@functools.partial(jax.jit, static_argnames=("max_block_bytes",))
def positional_encoding_forward(x, pe_table, *, max_block_bytes=4 * 1024 * 1024):
    """x: (B, S, H) batch-first; pe_table: (max_seq_len, H). Returns x + pe[:S]."""
    B, S, H = x.shape
    L = S * H
    out_dtype = x.dtype                      # buffer follows module dtype in PyTorch
    itemsize = jnp.dtype(out_dtype).itemsize

    x2 = x.reshape(B, L)                                       # free metadata reshape
    pe2 = pe_table[:S, :].astype(out_dtype).reshape(1, L)      # tiny cast only

    tb, tn = _pick_tiles(B, L, itemsize, max_block_bytes)
    grid = (pl.cdiv(L, tn), pl.cdiv(B, tb))   # lane tiles outer -> PE block reused

    cost = pl.CostEstimate(flops=B * L, transcendentals=0,
                           bytes_accessed=(2 * B * L + L) * itemsize)

    out = pl.pallas_call(
        _add_pe_kernel,
        out_shape=jax.ShapeDtypeStruct((B, L), out_dtype),
        grid=grid,
        in_specs=[pl.BlockSpec((tb, tn), lambda j, i: (i, j)),
                  pl.BlockSpec((1, tn), lambda j, i: (0, j))],
        out_specs=pl.BlockSpec((tb, tn), lambda j, i: (i, j)),
        compiler_params=pltpu.CompilerParams(
            dimension_semantics=("parallel", "parallel"),
            vmem_limit_bytes=48 * 1024 * 1024),
        cost_estimate=cost,
    )(x2, pe2)
    return out.reshape(B, S, H)

# TODO(synk): for B < 8 one could fold part of S into the row axis to fill all
# 8 sublanes per vreg; skipped since the kernel is HBM-bound and large lane
# tiles already saturate bandwidth.


# ----------------------------------- main -----------------------------------

if __name__ == "__main__":
    key = jax.random.PRNGKey(0)
    k1, k2, k3, k4 = jax.random.split(key, 4)

    # 1) Small shapes consistent with the module usage: (B, S, hidden_dim).
    B, S, HIDDEN = 2, 8, 32
    pe_table = positional_encoding_table(HIDDEN)                 # (2000, 32) buffer
    x = jax.random.normal(k1, (B, S, HIDDEN), jnp.float32)
    y = positional_encoding_forward(x, pe_table)
    jax.block_until_ready(y)
    ref = x + pe_table[:S, :][None, :, :]
    assert y.shape == (B, S, HIDDEN)
    assert y.dtype == x.dtype
    assert bool(jnp.all(jnp.isfinite(y)))
    assert bool(jnp.allclose(y, ref, atol=1e-6, rtol=1e-6))

    # 2) Larger aligned case (B multiple of 8, S*H multiple of 128) -> multi-step
    #    parallel grid exercising the lane-dense tiled path.
    B2, S2, H2 = 8, 64, 128
    pe_table2 = positional_encoding_table(H2)
    x2 = jax.random.normal(k2, (B2, S2, H2), jnp.float32)
    y2 = positional_encoding_forward(x2, pe_table2)
    jax.block_until_ready(y2)
    ref2 = x2 + pe_table2[:S2, :][None, :, :]
    assert bool(jnp.allclose(y2, ref2, atol=1e-6, rtol=1e-6))

    # 3) Ragged case (B % 8 != 0 and (S*H) % 128 != 0) -> cdiv / masked blocks.
    B3, S3, H3 = 3, 5, 24
    pe_table3 = positional_encoding_table(H3)
    x3 = jax.random.normal(k3, (B3, S3, H3), jnp.float32)
    y3 = positional_encoding_forward(x3, pe_table3)
    jax.block_until_ready(y3)
    ref3 = x3 + pe_table3[:S3, :][None, :, :]
    assert bool(jnp.allclose(y3, ref3, atol=1e-6, rtol=1e-6))

    # 4) bf16 input: output stays bf16 (no f32 up-cast pass over x).
    B4, S4, H4 = 2, 16, 64
    pe_table4 = positional_encoding_table(H4)
    x4 = jax.random.normal(k4, (B4, S4, H4), jnp.float32).astype(jnp.bfloat16)
    y4 = positional_encoding_forward(x4, pe_table4)
    jax.block_until_ready(y4)
    ref4 = x4 + pe_table4[:S4, :].astype(jnp.bfloat16)[None, :, :]
    assert y4.dtype == jnp.bfloat16
    assert bool(jnp.allclose(y4.astype(jnp.float32), ref4.astype(jnp.float32),
                             atol=2e-2, rtol=2e-2))

    print("KERNEL_OK")
</pallas_src>

<mosaic_0001>
module attributes {stable_mosaic.version = 11 : i64} {
  func.func @_add_pe_kernel(%arg0: i32, %arg1: i32, %arg2: memref<8x128xf32, #tpu.memory_space<vmem>>, %arg3: memref<1x128xf32, #tpu.memory_space<vmem>>, %arg4: memref<8x128xf32, #tpu.memory_space<vmem>>) attributes {dimension_semantics = [#tpu.dimension_semantics<parallel>, #tpu.dimension_semantics<parallel>], iteration_bounds = array<i64: 2, 1>, scalar_prefetch = 0 : i64, scratch_operands = 0 : i64, tpu.core_type = #tpu.core_type<tc>, window_params = [{transform_indices = @transform_0, window_bounds = array<i64: 8, 128>}, {transform_indices = @transform_1, window_bounds = array<i64: 1, 128>}, {transform_indices = @transform_2, window_bounds = array<i64: 8, 128>}]} {
    %c0 = arith.constant 0 : index
    %c0_0 = arith.constant 0 : index
    %0 = vector.load %arg2[%c0, %c0_0] : memref<8x128xf32, #tpu.memory_space<vmem>>, vector<8x128xf32>
    %c0_1 = arith.constant 0 : index
    %c0_2 = arith.constant 0 : index
    %1 = vector.load %arg3[%c0_1, %c0_2] : memref<1x128xf32, #tpu.memory_space<vmem>>, vector<1x128xf32>
    %2 = vector.broadcast %1 : vector<1x128xf32> to vector<8x128xf32>
    %3 = arith.addf %0, %2 : vector<8x128xf32>
    %c0_3 = arith.constant 0 : index
    %c0_4 = arith.constant 0 : index
    %4 = vector.load %arg4[%c0_3, %c0_4] : memref<8x128xf32, #tpu.memory_space<vmem>>, vector<8x128xf32>
    tpu.vector_store %arg4[%c0_3, %c0_4], %3 {strides = array<i32>} : memref<8x128xf32, #tpu.memory_space<vmem>>, vector<8x128xf32>,
    return
  }
  func.func @transform_0(%arg0: i32, %arg1: i32) -> (i32, i32) {
    %c0_i32 = arith.constant 0 : i32
    return %arg1, %arg0 : i32, i32
  }
  func.func @transform_1(%arg0: i32, %arg1: i32) -> (i32, i32) {
    %c0_i32 = arith.constant 0 : i32
    %c0_i32_0 = arith.constant 0 : i32
    return %c0_i32, %arg0 : i32, i32
  }
  func.func @transform_2(%arg0: i32, %arg1: i32) -> (i32, i32) {
    %c0_i32 = arith.constant 0 : i32
    return %arg1, %arg0 : i32, i32
  }
}

</mosaic_0001>

<bundles_post_ra>
// kernel: positional_encoding_forward.1
= control target key start
LH: loop header
LB: loop body
LE: loop exit
PB: predicated region body
PF: predicated region fallthrough
CT: control target
= control target key end

     0   :  { %s634_s9 = smov 0   ;;  %s636_s10 = smov 0   ;;  %s711_s0 = inlined_call_operand.vmem [shape: f32[2,256], index: 0, kind: input, shape index: {}]   ;;  %s712_s1 = inlined_call_operand.vmem [shape: f32[1,256], index: 1, kind: input, shape index: {}]   ;;  %s713_s2 = inlined_call_operand.vmem [shape: f32[2,256], index: 2, kind: output, shape index: {}]  }
   0x1   :  { %s638_s11 = smov 0   ;;  %s640_s12 = smov 0  }
   0x2   :  { %s642_s13 = smov 0  }
   0x3 LB: > { %s24_s14 = sadd.s32 1, %s605_s12  ;;  %s417_s15 = sadd.s32 4294967295, %s609_s13   ;;  %s609_s13 = sphi %s642_s13, %s12_s13   ;;  %s605_s12 = sphi %s640_s12, %s718_s12   ;;  %s601_s11 = sphi %s638_s11, %s717_s11   ;;  %s597_s10 = sphi %s636_s10, %s716_s10   ;;  %s593_s9 = sphi %s634_s9, %s715_s9  }
   0x4   : > { %p26_p0 = scmp.ge.s32.totalorder %s24_s14, 2  ;;  %p40_p1 = scmp.ne.s32.totalorder %s597_s10, %s593_s9 }
   0x5   : > { %p41_p2 = scmp.eq.s32.totalorder %s609_s13, 0  ;;  %p98_p4 = scmp.eq.s32.totalorder %s417_s15, 1 }
   0x6   : > { %s720_s14 = smov (%p26_p0, %s24_s14), 0  ;;  %s33_s17 = sadd.s32 1, %s597_s10 }
   0x7   : > { %p42_p3 = por %p41_p2, %p40_p1  ;;  %s29_s16 = ssub.s32 %s605_s12, %s720_s14 }
   0x8   : > { %p31_p5 = scmp.eq.s32.totalorder %s29_s16, 0  ;;  %p669_p6 = por %p98_p4, %p40_p1 }
   0x9   : > { %p420_p7 = scmp.ge.s32.totalorder %s609_s13, 2 }
   0xa   : > { %s674_s19 = scalar_select %p31_p5, %s597_s10, %s33_s17  }
   0xb   : > { %120 = sbr.rel (%p420_p7) target bundleno = 35 (0x23), region = 16 }
  0x12   : > { %123 = sbr.rel (!%p42_p3) target bundleno = 35 (0x23), region = 20  ;;  %s125_s20 = sand.u32 (%p42_p3), 1, %s597_s10  }
  0x13   : > { %s422_s21 = sshll.u32 (%p42_p3), %s605_s12, 1  ;;  %s421_s22 = sshll.u32 (%p42_p3), %s125_s20, 3 }
  0x14   : > { %s135_s25 = scalar_lea.vmem (%p42_p3), %s711_s0, %s422_s21   ;;  %s127_s26 = scalar_lea.vmem (%p42_p3), [#allocation2], %s421_s22  }
  0x15   : > { %s611_s27 = smov (%p42_p3), 0  }
  0x19 LB: >> { %v153_v0 = vld [vmem:[%s135_s25] sm:$0x3]  ;;  %s147_s27 = sadd.s32 1, %s613_s27   ;;  %s613_s27 = sphi %s611_s27, %s147_s27  }
  0x1a   : >> { %154 = vst [vmem:[%s127_s26] sm:$0x3] %v153_v0  ;;  %p146_p8 = scmp.ge.s32.totalorder %s147_s27, 1 }
  0x1c   : > { %149 = sbr.rel (!%p146_p8) target bundleno = 25 (0x19), region = 134 }
  0x23 PF: > { %p425_p9 = scmp.ge.s32.totalorder %s609_s13, 1  ;;  %p191_p10 = scmp.lt.s32.totalorder %s609_s13, 3 }
  0x25   : > { %p192_p11 = pnand %p425_p9, %p191_p10 }
  0x26   : > { %s198_s28 = sand.u32 (!%p192_p11), 1, %s593_s9   ;;  %p224_p12 = scmp.lt.s32.totalorder (!%p192_p11), %s601_s11, 1 }
  0x27   : > { %195 = sbr.rel (%p192_p11) target bundleno = 64 (0x40), region = 58  ;;  %s426_s29 = sshll.u32 (!%p192_p11), %s198_s28, 3 }
  0x28   : > { %s200_s3 = scalar_lea.vmem (!%p192_p11), [#allocation2], %s426_s29  ;;  %s220_s7 = scalar_lea.vmem (!%p192_p11), [#allocation3], %s426_s29  }
  0x29   : > { %v230_v1 = vld [vmem:[%s200_s3] sm:$0xff] (!%p192_p11) }
  0x2e   : > { %s225_s30 = scalar_select %p224_p12, %s601_s11, 1 }
  0x2f   : > { %246 = sbr.rel (!%p669_p6) target bundleno = 64 (0x40), region = 66  ;;  %s430_s8 = sshll.u32 (%p669_p6), %s601_s11, 1 }
  0x30   : > { %s226_s6 = scalar_lea.vmem %s712_s1, %s225_s30  ;;  %s254_s16 = scalar_lea.vmem (%p669_p6), %s713_s2, %s430_s8  }
  0x31   : > { %v428_v2 = vld [vmem:[%s226_s6] ss:$0 sm:$0xff]  ;;  %s615_s17 = smov (%p669_p6), 0  }
  0x32   : > { %v238_v3 = vadd.f32 %v428_v2, %v230_v1 }
  0x34   : > { %239 = vst [vmem:[%s220_s7] sm:$0xff] %v238_v3 }
  0x36 LB: >> { %s266_s17 = sadd.s32 1, %s617_s17   ;;  %s617_s17 = sphi %s615_s17, %s266_s17  }
  0x37   : >> { %p265_p13 = scmp.ge.s32.totalorder %s266_s17, 1 }
  0x39   : > { %268 = sbr.rel (!%p265_p13) target bundleno = 54 (0x36), region = 145 }
  0x3b   : >> { %v272_v4 = vld [vmem:[%s220_s7] sm:$0x3] }
  0x3c   : >> { %273 = vst [vmem:[%s254_s16] sm:$0x3] %v272_v4 }
  0x40 PF: > { %s12_s13 = sadd.s32 1, %s609_s13   ;;  %s715_s9 = smov %s597_s10 }
  0x41   : > { %p9_p0 = scmp.ge.s32.totalorder %s12_s13, 4   ;;  %s716_s10 = smov %s674_s19 }
  0x42   : > { %s717_s11 = smov %s605_s12  ;;  %s718_s12 = smov %s720_s14 }
  0x43   :  { %11 = sbr.rel (!%p9_p0) target bundleno = 3 (0x3), region = 156 }

</bundles_post_ra>
